<compile_context>
chip_gen: v7x
topology: tpu7x:2x2x1
jax: 0.10.0
libtpu: 0.0.40
codegen_flags: <defaults>
</compile_context>

<pallas_src>
import functools

import jax
import jax.numpy as jnp
from jax import lax
from jax.experimental import pallas as pl
from jax.experimental.pallas import tpu as pltpu

ALPHA = 0.25
GAMMA = 2

_LANE = 128
_SUBLANE = 8
_TARGET_BLOCK_BYTES = 4 << 20            # per input per grid block (chunked path)
_TARGET_BLOCK_BYTES_UNCHUNKED = 2 << 20  # when a single (H, W) slab is tiled on H
_TARGET_CHUNK_BYTES = 256 << 10          # f32 working set per in-kernel loop iter
_VMEM_LIMIT_BYTES = 40 << 20             # safe on v5e/v6e (128 MiB) and v7x (64 MiB)


def _ceil_div(a, b):
    return -(-a // b)


def _ceil_to(a, m):
    return _ceil_div(a, m) * m


def _vmem_slab_bytes(h, w, itemsize):
    # Approximate VMEM footprint of one (h, w) slab (lane pad to 128, sublane
    # pad to 8).  Slightly optimistic for bf16 sublane packing; fine as a
    # sizing heuristic.
    return _ceil_to(max(h, 1), _SUBLANE) * _ceil_to(max(w, 1), _LANE) * itemsize


def _bce_partial_sum_kernel(
    x_ref, t_ref, acc_ref, *,
    B, H, bb, hh, chunk, n_chunks, n_bb_inner,
    mask_b, mask_h, hard_labels,
):
    """Accumulate the sum of per-element BCE terms of one (bb, hh, W) block
    into the per-split (1, hh, W) f32 accumulator (the resident output block).
    """
    s = pl.program_id(0)   # split axis (multi-TensorCore "parallel")
    i = pl.program_id(1)   # B-block within the split     (reduction)
    j = pl.program_id(2)   # H-block                      (reduction)

    @pl.when(jnp.logical_and(i == 0, j == 0))
    def _():
        acc_ref[...] = jnp.zeros_like(acc_ref)

    # Logical (un-clamped) offsets of this block.  A duplicated tail block
    # from an uneven split lands at b0 >= B and is therefore fully masked.
    b0 = (s * n_bb_inner + i) * bb
    h0 = j * hh

    def bce_elem(x, y):
        if hard_labels:
            # y in {0, 1}: single-log form -> halves EUP transcendentals.
            z = y * x + (1.0 - y) * (1.0 - x)
            return -jnp.maximum(jnp.log(z), -100.0)
        # General soft-target form of F.binary_cross_entropy; each log term
        # clamped at -100 exactly like PyTorch.
        log_x = jnp.maximum(jnp.log(x), -100.0)
        log_1mx = jnp.maximum(jnp.log1p(-x), -100.0)
        return -(y * log_x + (1.0 - y) * log_1mx)

    def accumulate(masked):
        def body(k, carry):
            start = k * chunk
            if not isinstance(start, int):
                start = pl.multiple_of(start, chunk)
            x = x_ref[pl.ds(start, chunk)].astype(jnp.float32)
            y = t_ref[pl.ds(start, chunk)].astype(jnp.float32)
            bce = bce_elem(x, y)
            if masked:
                valid = None
                if mask_b:
                    b_ids = (lax.broadcasted_iota(jnp.int32, bce.shape, 0)
                             + (b0 + start))
                    valid = b_ids < B
                if mask_h:
                    h_ids = lax.broadcasted_iota(jnp.int32, bce.shape, 1) + h0
                    vh = h_ids < H
                    valid = vh if valid is None else jnp.logical_and(valid, vh)
                bce = jnp.where(valid, bce, 0.0)   # NaN-safe select
            # Pure VPU adds: reduce only the leading axis of the chunk.
            acc_ref[...] += bce.sum(axis=0, keepdims=True)
            return carry

        if n_chunks == 1:
            body(0, 0)
        else:
            lax.fori_loop(0, n_chunks, body, 0, unroll=n_chunks <= 8)

    if mask_b or mask_h:
        conds = []
        if mask_b:
            conds.append(b0 + bb > B)
        if mask_h:
            conds.append(h0 + hh > H)
        needs_mask = conds[0] if len(conds) == 1 else jnp.logical_or(*conds)

        @pl.when(needs_mask)           # edge / duplicated blocks only
        def _():
            accumulate(True)

        @pl.when(jnp.logical_not(needs_mask))   # fast interior path
        def _():
            accumulate(False)
    else:
        accumulate(False)


def focal_loss(inputs, targets, alpha=ALPHA, gamma=GAMMA, hard_labels=False):
    """Pallas TPU focal loss (logits=False, reduce=True).  Returns a scalar.

    hard_labels=True enables the single-log BCE path (valid only when targets
    are exactly 0/1); the default False matches F.binary_cross_entropy for
    general soft targets.
    """
    assert inputs.shape == targets.shape
    n_valid = int(inputs.size)
    if n_valid == 0:
        return jnp.array(jnp.nan, jnp.float32)   # torch.mean of empty -> nan

    def as_streamable(a):
        # Stream f32 / bf16 natively (bf16 halves HBM bytes); anything else is
        # cast once in the wrapper.
        if a.dtype in (jnp.float32, jnp.bfloat16):
            return a
        return a.astype(jnp.float32)

    x = as_streamable(inputs)
    y = as_streamable(targets)

    # Layout-free view: collapse the leading dims, keep the last two dims.
    if x.ndim < 2:
        n = n_valid
        if n % _LANE == 0 and n >= _LANE:
            x = x.reshape(n // _LANE, _LANE)
            y = y.reshape(n // _LANE, _LANE)
        else:
            x = x.reshape(1, n)
            y = y.reshape(1, n)
    H, W = x.shape[-2], x.shape[-1]
    B = n_valid // (H * W)
    x3 = x.reshape(B, H, W)
    y3 = y.reshape(B, H, W)

    itemsize = max(x3.dtype.itemsize, y3.dtype.itemsize)
    slab_bytes = _vmem_slab_bytes(H, W, itemsize)

    # ---- tile-size selection (biggest VMEM-safe blocks) -----------------
    if slab_bytes <= _TARGET_BLOCK_BYTES or H <= _SUBLANE:
        hh = H
    else:
        # A single (H, W) slab is too big: tile H in sublane-aligned rows.
        # TODO(synk): this (B tiny, H huge) branch is not sub-chunked inside
        # the kernel, so it uses a smaller block target; extremely wide W
        # (never tiled) would additionally need a W-tiling path.
        rows = _TARGET_BLOCK_BYTES_UNCHUNKED // (_ceil_to(W, _LANE) * itemsize)
        rows = max(_SUBLANE, (rows // _SUBLANE) * _SUBLANE)
        hh = rows if rows < H else H

    block_slab_bytes = _vmem_slab_bytes(hh, W, itemsize)
    bb = max(1, min(B, _TARGET_BLOCK_BYTES // block_slab_bytes))

    # In-kernel sub-chunking along the leading axis keeps the f32 BCE chain's
    # temporaries at ~256 KiB instead of materializing multi-MiB VMEM arrays.
    f32_slab_bytes = _vmem_slab_bytes(hh, W, 4)
    chunk = max(1, min(bb, _TARGET_CHUNK_BYTES // f32_slab_bytes))
    bb = (bb // chunk) * chunk
    n_chunks = bb // chunk

    n_bb_total = _ceil_div(B, bb)
    n_hh = _ceil_div(H, hh)

    # Leading split axis: lets multi-TensorCore parts shard the reduction.
    # Sized so single-TC chips (v5e/v6e) pay at most one duplicated, fully
    # masked block, and only when that overhead is already negligible.
    n_split = 2 if (n_bb_total >= 2 and
                    (n_bb_total % 2 == 0 or n_bb_total >= 8)) else 1
    n_bb_inner = _ceil_div(n_bb_total, n_split)

    mask_b = (n_split * n_bb_inner * bb) != B
    mask_h = (n_hh * hh) != H

    def in_index_map(s, i, j):
        # Clamp the (possibly) duplicated tail block of an uneven split; its
        # contribution is masked to zero inside the kernel (b0 uses the
        # un-clamped index).
        return (jnp.minimum(s * n_bb_inner + i, n_bb_total - 1), j, 0)

    kernel = functools.partial(
        _bce_partial_sum_kernel,
        B=B, H=H, bb=bb, hh=hh, chunk=chunk, n_chunks=n_chunks,
        n_bb_inner=n_bb_inner, mask_b=mask_b, mask_h=mask_h,
        hard_labels=hard_labels,
    )

    partials = pl.pallas_call(
        kernel,
        out_shape=jax.ShapeDtypeStruct((n_split, hh, W), jnp.float32),
        grid_spec=pltpu.PrefetchScalarGridSpec(
            num_scalar_prefetch=0,
            grid=(n_split, n_bb_inner, n_hh),
            in_specs=[
                pl.BlockSpec((bb, hh, W), in_index_map),
                pl.BlockSpec((bb, hh, W), in_index_map),
            ],
            out_specs=pl.BlockSpec((1, hh, W), lambda s, i, j: (s, 0, 0)),
        ),
        compiler_params=pltpu.CompilerParams(
            dimension_semantics=("parallel", "arbitrary", "arbitrary"),
            vmem_limit_bytes=_VMEM_LIMIT_BYTES,
        ),
    )(x3, y3)

    # Tiny finalize on the small partial-sum slab.
    mean_bce = jnp.sum(partials) / jnp.float32(n_valid)
    pt = jnp.exp(-mean_bce)
    return alpha * (1.0 - pt) ** gamma * mean_bce


def _reference_focal_loss(inputs, targets, alpha=ALPHA, gamma=GAMMA):
    x = inputs.astype(jnp.float32)
    y = targets.astype(jnp.float32)
    log_x = jnp.maximum(jnp.log(x), -100.0)
    log_1mx = jnp.maximum(jnp.log1p(-x), -100.0)
    bce = jnp.mean(-(y * log_x + (1.0 - y) * log_1mx))
    pt = jnp.exp(-bce)
    return alpha * (1.0 - pt) ** gamma * bce


if __name__ == "__main__":
    key = jax.random.PRNGKey(0)
    k1, k2 = jax.random.split(key)
    # NCHW, matching the PyTorch convention: (batch=2, channels=4, 16, 16)
    inputs = jax.nn.sigmoid(jax.random.normal(k1, (2, 4, 16, 16), jnp.float32))
    targets = (jax.random.uniform(k2, (2, 4, 16, 16)) > 0.5).astype(jnp.float32)

    loss = jax.block_until_ready(focal_loss(inputs, targets))
    ref = jax.block_until_ready(_reference_focal_loss(inputs, targets))
    assert jnp.allclose(loss, ref, rtol=1e-5, atol=1e-6), (loss, ref)
    print("KERNEL_OK")
</pallas_src>

<mosaic_0001>
module attributes {stable_mosaic.version = 11 : i64} {
  func.func @_bce_partial_sum_kernel(%arg0: i32, %arg1: i32, %arg2: i32, %arg3: memref<8x16x16xf32, #tpu.memory_space<vmem>>, %arg4: memref<8x16x16xf32, #tpu.memory_space<vmem>>, %arg5: memref<1x16x16xf32, #tpu.memory_space<vmem>>) attributes {dimension_semantics = [#tpu.dimension_semantics<parallel>, #tpu.dimension_semantics<arbitrary>, #tpu.dimension_semantics<arbitrary>], iteration_bounds = array<i64: 1, 1, 1>, scalar_prefetch = 0 : i64, scratch_operands = 0 : i64, tpu.core_type = #tpu.core_type<tc>, window_params = [{transform_indices = @transform_0, window_bounds = array<i64: 8, 16, 16>}, {transform_indices = @transform_1, window_bounds = array<i64: 8, 16, 16>}, {transform_indices = @transform_2, window_bounds = array<i64: 1, 16, 16>}]} {
    %c0_i32 = arith.constant 0 : i32
    %0 = arith.cmpi eq, %arg1, %c0_i32 : i32
    %c0_i32_0 = arith.constant 0 : i32
    %1 = arith.cmpi eq, %arg2, %c0_i32_0 : i32
    %2 = arith.andi %0, %1 : i1
    %3 = arith.extui %2 : i1 to i32
    %c0_i32_1 = arith.constant 0 : i32
    %4 = arith.cmpi ne, %3, %c0_i32_1 : i32
    scf.if %4 {
      %cst_18 = arith.constant 0.000000e+00 : f32
      %27 = vector.broadcast %cst_18 : f32 to vector<1x16x16xf32>
      %c0_19 = arith.constant 0 : index
      %c0_20 = arith.constant 0 : index
      %c0_21 = arith.constant 0 : index
      %28 = vector.load %arg5[%c0_19, %c0_20, %c0_21] : memref<1x16x16xf32, #tpu.memory_space<vmem>>, vector<1x16x16xf32>
      tpu.vector_store %arg5[%c0_19, %c0_20, %c0_21], %27 {strides = array<i32>} : memref<1x16x16xf32, #tpu.memory_space<vmem>>, vector<1x16x16xf32>,
    } else {
    }
    %c0 = arith.constant 0 : index
    %c0_2 = arith.constant 0 : index
    %c0_3 = arith.constant 0 : index
    %5 = vector.load %arg3[%c0, %c0_2, %c0_3] : memref<8x16x16xf32, #tpu.memory_space<vmem>>, vector<8x16x16xf32>
    %c0_4 = arith.constant 0 : index
    %c0_5 = arith.constant 0 : index
    %c0_6 = arith.constant 0 : index
    %6 = vector.load %arg4[%c0_4, %c0_5, %c0_6] : memref<8x16x16xf32, #tpu.memory_space<vmem>>, vector<8x16x16xf32>
    %7 = math.log %5 : vector<8x16x16xf32>
    %cst = arith.constant -1.000000e+02 : f32
    %8 = vector.broadcast %cst : f32 to vector<8x16x16xf32>
    %9 = arith.maximumf %7, %8 : vector<8x16x16xf32>
    %cst_7 = arith.constant 0.000000e+00 : f32
    %10 = vector.broadcast %cst_7 : f32 to vector<8x16x16xf32>
    %11 = arith.subf %10, %5 : vector<8x16x16xf32>
    %12 = math.log1p %11 : vector<8x16x16xf32>
    %cst_8 = arith.constant -1.000000e+02 : f32
    %13 = vector.broadcast %cst_8 : f32 to vector<8x16x16xf32>
    %14 = arith.maximumf %12, %13 : vector<8x16x16xf32>
    %15 = arith.mulf %6, %9 : vector<8x16x16xf32>
    %cst_9 = arith.constant 1.000000e+00 : f32
    %16 = vector.broadcast %cst_9 : f32 to vector<8x16x16xf32>
    %17 = arith.subf %16, %6 : vector<8x16x16xf32>
    %18 = arith.mulf %17, %14 : vector<8x16x16xf32>
    %19 = arith.addf %15, %18 : vector<8x16x16xf32>
    %cst_10 = arith.constant 0.000000e+00 : f32
    %20 = vector.broadcast %cst_10 : f32 to vector<8x16x16xf32>
    %21 = arith.subf %20, %19 : vector<8x16x16xf32>
    %c0_11 = arith.constant 0 : index
    %c0_12 = arith.constant 0 : index
    %c0_13 = arith.constant 0 : index
    %22 = vector.load %arg5[%c0_11, %c0_12, %c0_13] : memref<1x16x16xf32, #tpu.memory_space<vmem>>, vector<1x16x16xf32>
    %cst_14 = arith.constant dense<0.000000e+00> : vector<16x16xf32>
    %23 = vector.multi_reduction <add>, %21, %cst_14 [0] : vector<8x16x16xf32> to vector<16x16xf32>
    %24 = vector.shape_cast %23 : vector<16x16xf32> to vector<1x16x16xf32>
    %25 = arith.addf %22, %24 : vector<1x16x16xf32>
    %c0_15 = arith.constant 0 : index
    %c0_16 = arith.constant 0 : index
    %c0_17 = arith.constant 0 : index
    %26 = vector.load %arg5[%c0_15, %c0_16, %c0_17] : memref<1x16x16xf32, #tpu.memory_space<vmem>>, vector<1x16x16xf32>
    tpu.vector_store %arg5[%c0_15, %c0_16, %c0_17], %25 {strides = array<i32>} : memref<1x16x16xf32, #tpu.memory_space<vmem>>, vector<1x16x16xf32>,
    return
  }
  func.func @transform_0(%arg0: i32, %arg1: i32, %arg2: i32) -> (i32, i32, i32) {
    %c1_i32 = arith.constant 1 : i32
    %0 = arith.muli %arg0, %c1_i32 : i32
    %1 = arith.addi %0, %arg1 : i32
    %c0_i32 = arith.constant 0 : i32
    %2 = arith.minsi %1, %c0_i32 : i32
    %c0_i32_0 = arith.constant 0 : i32
    %c0_i32_1 = arith.constant 0 : i32
    return %2, %arg2, %c0_i32_0 : i32, i32, i32
  }
  func.func @transform_1(%arg0: i32, %arg1: i32, %arg2: i32) -> (i32, i32, i32) {
    %c1_i32 = arith.constant 1 : i32
    %0 = arith.muli %arg0, %c1_i32 : i32
    %1 = arith.addi %0, %arg1 : i32
    %c0_i32 = arith.constant 0 : i32
    %2 = arith.minsi %1, %c0_i32 : i32
    %c0_i32_0 = arith.constant 0 : i32
    %c0_i32_1 = arith.constant 0 : i32
    return %2, %arg2, %c0_i32_0 : i32, i32, i32
  }
  func.func @transform_2(%arg0: i32, %arg1: i32, %arg2: i32) -> (i32, i32, i32) {
    %c0_i32 = arith.constant 0 : i32
    %c0_i32_0 = arith.constant 0 : i32
    %c0_i32_1 = arith.constant 0 : i32
    return %arg0, %c0_i32, %c0_i32_0 : i32, i32, i32
  }
}

</mosaic_0001>

<bundles_post_ra>
// kernel: tpu_custom_call.1
= control target key start
LH: loop header
LB: loop body
LE: loop exit
PB: predicated region body
PF: predicated region fallthrough
CT: control target
= control target key end

     0   :  { %7 = vsyncpa [#allocation3], 0  ;;  %s915_s0 = inlined_call_operand.hbm [shape: f32[8,16,16], index: 0, kind: input, shape index: {}]   ;;  %s916_s1 = inlined_call_operand.hbm [shape: f32[8,16,16], index: 1, kind: input, shape index: {}]   ;;  %s917_s2 = inlined_call_operand.hbm [shape: f32[1,16,16], index: 2, kind: output, shape index: {}]  }
   0x1   :  { %8 = vsyncpa [#allocation6], 0 }
   0x2   :  { %9 = vsyncpa [#allocation4], 0  ;;  %s608_s9 = smov [#allocation2]   ;;  %s536_s13 = scalar_lea.hbm %s915_s0, 2048 }
   0x3   :  { %s22_s10 = sshll.u32 %s608_s9, 4  ;;  %p537_p0 = scmp.ne.s32.totalorder %s915_s0, %s536_s13  ;;  %s23_s10 = int_to_ptr.vmem [resolvable:$true] %s22_s10 }
   0x4   :  { %p540_p1 = scmp.lt.u32.totalorder %s536_s13, %s915_s0 }
   0x6   :  { %p542_p2 = pnand %p540_p1, %p537_p0 }
   0x8   :  { %545 = shalt.err (!%p542_p2)
}
   0x9   :  { %s546_s18 = scalar_lea.vmem %s23_s10, 2048  ;;  %p551_p4 = scmp.lt.s32.totalorder %s23_s10, %s23_s10 }
   0xa   :  { %p547_p3 = scmp.ne.s32.totalorder %s23_s10, %s546_s18  ;;  %p552_p5 = scmp.lt.s32.totalorder %s546_s18, %s546_s18 }
   0xc   :  { %p553_p6 = por %p552_p5, %p551_p4 }
   0xe   :  { %p554_p7 = pnand %p553_p6, %p547_p3 }
  0x10   :  { %557 = shalt.err (!%p554_p7)
}
  0x11   :  { %s609_s19 = smov 128   ;;  %s610_s20 = smov 8  }
  0x12   :  { %28 = dma.hbm_to_vmem [thread:$0]  %s915_s0, 2048, %s23_s10, [#allocation3], %s609_s19, %s609_s19, %s610_s20  }
  0x13   :  { %s611_s23 = smov [#allocation5]   ;;  %s558_s27 = scalar_lea.hbm %s916_s1, 2048 }
  0x14   :  { %s41_s24 = sshll.u32 %s611_s23, 4  ;;  %p559_p8 = scmp.ne.s32.totalorder %s916_s1, %s558_s27  ;;  %s42_s24 = int_to_ptr.vmem [resolvable:$true] %s41_s24 }
  0x15   :  { %p562_p9 = scmp.lt.u32.totalorder %s558_s27, %s916_s1 }
  0x17   :  { %p564_p10 = pnand %p562_p9, %p559_p8 }
  0x19   :  { %567 = shalt.err (!%p564_p10)
}
  0x1a   :  { %s568_s4 = scalar_lea.vmem %s42_s24, 2048  ;;  %p573_p12 = scmp.lt.s32.totalorder %s42_s24, %s42_s24 }
  0x1b   :  { %p569_p11 = scmp.ne.s32.totalorder %s42_s24, %s568_s4  ;;  %p574_p13 = scmp.lt.s32.totalorder %s568_s4, %s568_s4 }
  0x1d   :  { %p575_p0 = por %p574_p13, %p573_p12 }
  0x1f   :  { %p576_p1 = pnand %p575_p0, %p569_p11 }
  0x21   :  { %579 = shalt.err (!%p576_p1)
}
  0x22   :  { %47 = dma.hbm_to_vmem [thread:$0]  %s916_s1, 2048, %s42_s24, [#allocation6], %s609_s19, %s609_s19, %s610_s20  }
  0x23   :  { %602 = dma.done.wait [#allocation3], 2048  }
  0x24   :  { %603 = vsyncadd [#allocation3], 4294965248 }
  0x25   :  { %604 = dma.done.wait [#allocation6], 2048  }
  0x26   :  { %605 = vsyncadd [#allocation6], 4294965248  ;;  %vm68_vm0 = vcmask 130048   ;;  %v612_v0 = vmov 0.0   ;;  %v71_v1 = vld [vmem:[#allocation2] sm:$0xff]  ;;  %v73_v2 = vld [vmem:[#allocation2 + $0x10] sm:$0xff] }
  0x27   :  { %69 = vst.msk [vmem:[#allocation7] sm:$0xff] %vm68_vm0, %v612_v0  ;;  %70 = vst.msk [vmem:[#allocation7 + $0x8] sm:$0xff] %vm68_vm0, %v612_v0  ;;  %v75_v3 = vld [vmem:[#allocation2 + $0x20] sm:$0xff]  ;;  %v77_v4 = vld [vmem:[#allocation2 + $0x30] sm:$0xff]  ;;  %472 = vlog2.f32 %v71_v1  ;;  %v151_v6 = vsub.f32 0.0, %v71_v1  ;;  %v153_v8 = vsub.f32 0.0, %v73_v2 }
  0x28   :  { %v79_v5 = vld [vmem:[#allocation2 + $0x40] sm:$0xff]  ;;  %v81_v7 = vld [vmem:[#allocation2 + $0x50] sm:$0xff]  ;;  %474 = vlog2.f32 %v73_v2  ;;  %v155_v10 = vsub.f32 0.0, %v75_v3  ;;  %v157_v11 = vsub.f32 0.0, %v77_v4  ;;  %s613_s1 = smov [#allocation7]  }
  0x29   :  { %v83_v9 = vld [vmem:[#allocation2 + $0x60] sm:$0xff]  ;;  %476 = vlog2.f32 %v75_v3  ;;  %v159_v12 = vsub.f32 0.0, %v79_v5  ;;  %v170_v13 = vmul.f32 -0.5, %v151_v6  ;;  %v661_v14 = vsub.f32 0.0, %v81_v7  ;;  %v85_v20 = vld [vmem:[#allocation2 + $0x70] sm:$0xff]  ;;  %s449_s6 = sshll.u32 %s613_s1, 4  ;;  %s450_s6 = int_to_ptr.vmem [resolvable:$true] %s449_s6 }
  0x2a   :  { %478 = vlog2.f32 %v77_v4  ;;  %v167_v15 = vadd.f32 1.0, %v151_v6  ;;  %v188_v16 = vmul.f32 -0.5, %v153_v8  ;;  %v663_v17 = vsub.f32 0.0, %v83_v9  ;;  %v91_v46 = vld [vmem:[#allocation5 + $0x20] sm:$0xff]  ;;  %v97_v52 = vld [vmem:[#allocation5 + $0x50] sm:$0xff]  ;;  %s580_s7 = scalar_lea.vmem %s450_s6, 256  ;;  %p585_p3 = scmp.lt.s32.totalorder %s450_s6, %s450_s6 }
  0x2b   :  { %480 = vlog2.f32 %v79_v5  ;;  %v173_v18 = vand.u32 2147483647, %v151_v6  ;;  %v185_v19 = vadd.f32 1.0, %v153_v8  ;;  %v171_v21 = vadd.f32 1.0, %v170_v13  ;;  %v101_v57 = vld [vmem:[#allocation5 + $0x70] sm:$0xff]  ;;  %p581_p2 = scmp.ne.s32.totalorder %s450_s6, %s580_s7  ;;  %p586_p4 = scmp.lt.s32.totalorder %s580_s7, %s580_s7 }
  0x2c   :  { %482 = vlog2.f32 %v81_v7  ;;  %v203_v22 = vadd.f32 1.0, %v155_v10  ;;  %v206_v23 = vmul.f32 -0.5, %v155_v10  ;;  %v189_v24 = vadd.f32 1.0, %v188_v16 }
  0x2d   :  { %484 = vlog2.f32 %v83_v9  ;;  %v191_v25 = vand.u32 2147483647, %v153_v8  ;;  %v221_v26 = vadd.f32 1.0, %v157_v11  ;;  %v209_v28 = vand.u32 2147483647, %v155_v10  ;;  %p587_p5 = por %p586_p4, %p585_p3 }
  0x2e   :  { %486 = vlog2.f32 %v85_v20  ;;  %v207_v27 = vadd.f32 1.0, %v206_v23  ;;  %v224_v29 = vmul.f32 -0.5, %v157_v11  ;;  %v665_v30 = vsub.f32 0.0, %v85_v20 }
  0x2f   :  { %488 = vlog2.f32 %v167_v15  ;;  %v227_v31 = vand.u32 2147483647, %v157_v11  ;;  %v239_v32 = vadd.f32 1.0, %v159_v12  ;;  %v667_v34 = vmul.f32 %v171_v21, %v151_v6  ;;  %p588_p6 = pnand %p587_p5, %p581_p2 }
  0x30   :  { %490 = vlog2.f32 %v185_v19  ;;  %vm669_vm1 = vcmp.lt.f32.partialorder %v173_v18, 0.0004427343  ;;  %v225_v36 = vadd.f32 1.0, %v224_v29  ;;  %v242_v37 = vmul.f32 -0.5, %v159_v12 }
  0x31   :  { %v473_v33 = vpop.eup %472  ;;  %492 = vlog2.f32 %v203_v22  ;;  %v675_v40 = vmul.f32 %v189_v24, %v153_v8  ;;  %vm677_vm2 = vcmp.lt.f32.partialorder %v191_v25, 0.0004427343  ;;  %v245_v42 = vand.u32 2147483647, %v159_v12 }
  0x32   :  { %v475_v38 = vpop.eup %474  ;;  %v673_v39 = vmul.f32 0.6931472, %v473_v33  ;;  %494 = vlog2.f32 %v221_v26  ;;  %v683_v45 = vmul.f32 %v207_v27, %v155_v10  ;;  %vm685_vm3 = vcmp.lt.f32.partialorder %v209_v28, 0.0004427343 }
  0x33   :  { %v477_v43 = vpop.eup %476  ;;  %v681_v44 = vmul.f32 0.6931472, %v475_v38  ;;  %496 = vlog2.f32 %v239_v32  ;;  %v243_v47 = vadd.f32 1.0, %v242_v37  ;;  %v692_v51 = vmul.f32 %v225_v36, %v157_v11 }
  0x34   :  { %v479_v48 = vpop.eup %478  ;;  %v689_v49 = vmul.f32 0.6931472, %v477_v43  ;;  %v135_v50 = vmax.f32 %v673_v39, -100.0  ;;  %vm694_vm4 = vcmp.lt.f32.partialorder %v227_v31, 0.0004427343  ;;  %v257_v53 = vadd.f32 1.0, %v661_v14 }
  0x35   :  { %v481_v54 = vpop.eup %480  ;;  %v699_v55 = vmul.f32 0.6931472, %v479_v48  ;;  %v137_v56 = vmax.f32 %v681_v44, -100.0  ;;  %vm702_vm5 = vcmp.lt.f32.partialorder %v245_v42, 0.0004427343  ;;  %v260_v58 = vmul.f32 -0.5, %v661_v14 }
  0x36   :  { %v483_v59 = vpop.eup %482  ;;  %v707_v60 = vmul.f32 0.6931472, %v481_v54  ;;  %v244_v61 = vmul.f32 %v243_v47, %v159_v12  ;;  %498 = vlog2.f32 %v257_v53  ;;  %v263_v62 = vand.u32 2147483647, %v661_v14  ;;  %v89_v47 = vld [vmem:[#allocation5 + $0x10] sm:$0xff]  ;;  %v74_v48 = vld [vmem:[#allocation2 + $0x18] sm:$0xff] }
  0x37   :  { %v485_v63 = vpop.eup %484  ;;  %v710_v0 = vmul.f32 0.6931472, %v483_v59  ;;  %v139_v1 = vmax.f32 %v689_v49, -100.0  ;;  %v261_v2 = vadd.f32 1.0, %v260_v58  ;;  %v275_v3 = vadd.f32 1.0, %v663_v17  ;;  %v93_v54 = vld [vmem:[#allocation5 + $0x30] sm:$0xff] }
  0x38   :  { %v487_v4 = vpop.eup %486  ;;  %v128_v5 = vmul.f32 0.6931472, %v485_v63  ;;  %v141_v6 = vmax.f32 %v699_v55, -100.0  ;;  %v143_v7 = vmax.f32 %v707_v60, -100.0  ;;  %v278_v8 = vmul.f32 -0.5, %v663_v17  ;;  %v95_v55 = vld [vmem:[#allocation5 + $0x40] sm:$0xff] }
  0x39   :  { %v489_v9 = vpop.eup %488  ;;  %v717_v10 = vmul.f32 0.6931472, %v487_v4  ;;  %v145_v11 = vmax.f32 %v710_v0, -100.0  ;;  %vm720_vm6 = vcmp.lt.f32.partialorder %v263_v62, 0.0004427343  ;;  %500 = vlog2.f32 %v275_v3  ;;  %v99_v60 = vld [vmem:[#allocation5 + $0x60] sm:$0xff] }
  0x3a   :  { %v491_v13 = vpop.eup %490  ;;  %v169_v15 = vmul.f32 0.6931472, %v489_v9  ;;  %v262_v16 = vmul.f32 %v261_v2, %v661_v14  ;;  %v279_v18 = vadd.f32 1.0, %v278_v8  ;;  %v281_v19 = vand.u32 2147483647, %v663_v17 }
  0x3b   :  { %v493_v20 = vpop.eup %492  ;;  %v147_v21 = vmax.f32 %v128_v5, -100.0  ;;  %v187_v22 = vmul.f32 0.6931472, %v491_v13  ;;  %v293_v23 = vadd.f32 1.0, %v665_v30  ;;  %v296_v24 = vmul.f32 -0.5, %v665_v30 }
  0x3c   :  { %v495_v25 = vpop.eup %494  ;;  %v149_v26 = vmax.f32 %v717_v10, -100.0  ;;  %v175_v27 = vsel %vm669_vm1, %v667_v34, %v169_v15  ;;  %v205_v28 = vmul.f32 0.6931472, %v493_v20  ;;  %v280_v14 = vmul.f32 %v279_v18, %v663_v17  ;;  %v87_v17 = vld [vmem:[#allocation5] sm:$0xff] }
  0x3d   :  { %v497_v29 = vpop.eup %496  ;;  %v193_v31 = vsel %vm677_vm2, %v675_v40, %v187_v22  ;;  %v223_v32 = vmul.f32 0.6931472, %v495_v25  ;;  %502 = vlog2.f32 %v293_v23  ;;  %v297_v33 = vadd.f32 1.0, %v296_v24 }
  0x3e   :  { %v211_v36 = vsel %vm685_vm3, %v683_v45, %v205_v28  ;;  %v241_v37 = vmul.f32 0.6931472, %v497_v29  ;;  %vm739_vm7 = vcmp.lt.f32.partialorder %v281_v19, 0.0004427343  ;;  %v299_v34 = vand.u32 2147483647, %v665_v30 }
  0x3f   :  { %v229_v35 = vsel %vm694_vm4, %v692_v51, %v223_v32  ;;  %v298_v40 = vmul.f32 %v297_v33, %v665_v30  ;;  %v311_v41 = vmax.f32 %v175_v27, -100.0  ;;  %v313_v42 = vmax.f32 %v193_v31, -100.0 }
  0x40   :  { %v499_v43 = vpop.eup %498  ;;  %v247_v45 = vsel %vm702_vm5, %v244_v61, %v241_v37  ;;  %vm750_vm8 = vcmp.lt.f32.partialorder %v299_v34, 0.0004427343  ;;  %v315_v49 = vmax.f32 %v211_v36, -100.0  ;;  %v317_v53 = vmax.f32 %v229_v35, -100.0 }
  0x41   :  { %v259_v51 = vmul.f32 0.6931472, %v499_v43  ;;  %v319_v58 = vmax.f32 %v247_v45, -100.0  ;;  %v327_v30 = vmul.f32 %v135_v50, %v87_v17  ;;  %v329_v59 = vmul.f32 %v137_v56, %v89_v47 }
  0x42   :  { %v331_v61 = vmul.f32 %v139_v1, %v91_v46  ;;  %v333_v62 = vmul.f32 %v141_v6, %v93_v54  ;;  %v335_v63 = vmul.f32 %v143_v7, %v95_v55  ;;  %v337_v0 = vmul.f32 %v145_v11, %v97_v52 }
  0x43   :  { %v501_v2 = vpop.eup %500  ;;  %v265_v3 = vsel %vm720_vm6, %v262_v16, %v259_v51  ;;  %v339_v4 = vmul.f32 %v147_v21, %v99_v60  ;;  %v343_v5 = vsub.f32 1.0, %v87_v17  ;;  %v345_v8 = vsub.f32 1.0, %v89_v47  ;;  %v72_v47 = vld [vmem:[#allocation2 + $0x8] sm:$0xff] }
  0x44   :  { %v277_v9 = vmul.f32 0.6931472, %v501_v2  ;;  %v321_v13 = vmax.f32 %v265_v3, -100.0  ;;  %v347_v39 = vsub.f32 1.0, %v91_v46  ;;  %v349_v50 = vsub.f32 1.0, %v93_v54  ;;  %v76_v54 = vld [vmem:[#allocation2 + $0x28] sm:$0xff] }
  0x45   :  { %v351_v15 = vsub.f32 1.0, %v95_v55  ;;  %v353_v44 = vsub.f32 1.0, %v97_v52  ;;  %v355_v56 = vsub.f32 1.0, %v99_v60  ;;  %v357_v18 = vsub.f32 1.0, %v101_v57  ;;  %v78_v55 = vld [vmem:[#allocation2 + $0x38] sm:$0xff]  ;;  %v84_v3 = vld [vmem:[#allocation2 + $0x68] sm:$0xff] }
  0x46   :  { %v283_v1 = vsel %vm739_vm7, %v280_v14, %v277_v9  ;;  %v359_v6 = vmul.f32 %v343_v5, %v311_v41  ;;  %v361_v7 = vmul.f32 %v345_v8, %v313_v42  ;;  %v363_v11 = vmul.f32 %v347_v39, %v315_v49  ;;  %v86_v9 = vld [vmem:[#allocation2 + $0x78] sm:$0xff] }
  0x47   :  { %v503_v19 = vpop.eup %502  ;;  %v323_v12 = vmax.f32 %v283_v1, -100.0  ;;  %v365_v16 = vmul.f32 %v349_v50, %v317_v53  ;;  %v367_v20 = vmul.f32 %v351_v15, %v319_v58  ;;  %v369_v21 = vmul.f32 %v353_v44, %v321_v13  ;;  %v80_v58 = vld [vmem:[#allocation2 + $0x48] sm:$0xff] }
  0x48   :  { %v295_v22 = vmul.f32 0.6931472, %v503_v19  ;;  %v375_v23 = vadd.f32 %v359_v6, %v327_v30  ;;  %v377_v24 = vadd.f32 %v361_v7, %v329_v59  ;;  %v379_v25 = vadd.f32 %v363_v11, %v331_v61 }
  0x49   :  { %v371_v27 = vmul.f32 %v355_v56, %v323_v12  ;;  %v381_v28 = vadd.f32 %v365_v16, %v333_v62  ;;  %v383_v29 = vadd.f32 %v367_v20, %v335_v63  ;;  %v385_v31 = vadd.f32 %v369_v21, %v337_v0  ;;  %v82_v62 = vld [vmem:[#allocation2 + $0x58] sm:$0xff]  ;;  %v407_v12 = vld [vmem:[#allocation7] sm:$0xff] }
  0x4a   :  { %v301_v32 = vsel %vm750_vm8, %v298_v40, %v295_v22  ;;  %v391_v14 = vsub.f32 0.0, %v375_v23  ;;  %v393_v33 = vsub.f32 0.0, %v377_v24  ;;  %v395_v36 = vsub.f32 0.0, %v379_v25 }
  0x4b   :  { %v325_v37 = vmax.f32 %v301_v32, -100.0  ;;  %v341_v38 = vmul.f32 %v149_v26, %v101_v57  ;;  %v387_v34 = vadd.f32 %v371_v27, %v339_v4  ;;  %v397_v17 = vsub.f32 0.0, %v381_v28 }
  0x4c   :  { %v399_v35 = vsub.f32 0.0, %v383_v29  ;;  %v410_v41 = vsel %vm68_vm0, %v391_v14, 0.0  ;;  %v411_v42 = vsel %vm68_vm0, %v393_v33, 0.0  ;;  %v413_v43 = vsel %vm68_vm0, %v395_v36, 0.0 }
  0x4d   :  { %v373_v46 = vmul.f32 %v357_v18, %v325_v37  ;;  %v401_v45 = vsub.f32 0.0, %v385_v31  ;;  %v412_v40 = vadd.f32 %v411_v42, %v410_v41  ;;  %v403_v49 = vsub.f32 0.0, %v387_v34 }
  0x4e   :  { %v415_v53 = vsel %vm68_vm0, %v397_v17, 0.0  ;;  %504 = vlog2.f32 %v72_v47  ;;  %v152_v52 = vsub.f32 0.0, %v72_v47  ;;  %v417_v51 = vsel %vm68_vm0, %v399_v35, 0.0 }
  0x4f   :  { %v389_v10 = vadd.f32 %v373_v46, %v341_v38  ;;  %v414_v26 = vadd.f32 %v413_v43, %v412_v40  ;;  %506 = vlog2.f32 %v74_v48  ;;  %v154_v30 = vsub.f32 0.0, %v74_v48 }
  0x50   :  { %508 = vlog2.f32 %v76_v54  ;;  %v419_v57 = vsel %vm68_vm0, %v401_v45, 0.0  ;;  %v421_v61 = vsel %vm68_vm0, %v403_v49, 0.0  ;;  %v156_v63 = vsub.f32 0.0, %v76_v54 }
  0x51   :  { %v405_v59 = vsub.f32 0.0, %v389_v10  ;;  %v416_v60 = vadd.f32 %v415_v53, %v414_v26  ;;  %510 = vlog2.f32 %v78_v55  ;;  %v773_v0 = vsub.f32 0.0, %v78_v55 }
  0x52   :  { %512 = vlog2.f32 %v80_v58  ;;  %v775_v4 = vsub.f32 0.0, %v80_v58  ;;  %v176_v5 = vadd.f32 1.0, %v152_v52  ;;  %v179_v13 = vmul.f32 -0.5, %v152_v52 }
  0x53   :  { %v418_v2 = vadd.f32 %v417_v51, %v416_v60  ;;  %514 = vlog2.f32 %v82_v62  ;;  %v423_v8 = vsel %vm68_vm0, %v405_v59, 0.0  ;;  %v194_v39 = vadd.f32 1.0, %v154_v30 }
  0x54   :  { %516 = vlog2.f32 %v84_v3  ;;  %v182_v15 = vand.u32 2147483647, %v152_v52  ;;  %v197_v44 = vmul.f32 -0.5, %v154_v30  ;;  %v180_v56 = vadd.f32 1.0, %v179_v13 }
  0x55   :  { %v420_v50 = vadd.f32 %v419_v57, %v418_v2  ;;  %518 = vlog2.f32 %v86_v9  ;;  %v200_v18 = vand.u32 2147483647, %v154_v30  ;;  %v212_v1 = vadd.f32 1.0, %v156_v63 }
  0x56   :  { %520 = vlog2.f32 %v176_v5  ;;  %v778_v7 = vsub.f32 0.0, %v82_v62  ;;  %v198_v11 = vadd.f32 1.0, %v197_v44  ;;  %v780_v16 = vsub.f32 0.0, %v84_v3 }
  0x57   :  { %v422_v6 = vadd.f32 %v421_v61, %v420_v50  ;;  %522 = vlog2.f32 %v194_v39  ;;  %v215_v20 = vmul.f32 -0.5, %v156_v63  ;;  %v218_v21 = vand.u32 2147483647, %v156_v63 }
  0x58   :  { %v505_v19 = vpop.eup %504  ;;  %524 = vlog2.f32 %v212_v1  ;;  %v784_v25 = vsub.f32 0.0, %v86_v9  ;;  %v230_v27 = vadd.f32 1.0, %v773_v0  ;;  %v789_v31 = vmul.f32 %v180_v56, %v152_v52 }
  0x59   :  { %v507_v22 = vpop.eup %506  ;;  %v424_v23 = vadd.f32 %v423_v8, %v422_v6  ;;  %v782_v24 = vmul.f32 0.6931472, %v505_v19  ;;  %vm791_vm9 = vcmp.lt.f32.partialorder %v182_v15, 0.0004427343  ;;  %vm795_vm10 = vcmp.lt.f32.partialorder %v200_v18, 0.0004427343 }
  0x5a   :  { %v509_v28 = vpop.eup %508  ;;  %v787_v29 = vmul.f32 0.6931472, %v507_v22  ;;  %v216_v33 = vadd.f32 1.0, %v215_v20  ;;  %v233_v36 = vmul.f32 -0.5, %v773_v0  ;;  %v802_v17 = vmul.f32 %v198_v11, %v154_v30 }
  0x5b   :  { %v511_v37 = vpop.eup %510  ;;  %v440_v38 = vadd.f32 %v424_v23, %v407_v12  ;;  %v800_v34 = vmul.f32 0.6931472, %v509_v28  ;;  %526 = vlog2.f32 %v230_v27  ;;  %v136_v42 = vmax.f32 %v782_v24, -100.0 }
  0x5c   :  { %v513_v35 = vpop.eup %512  ;;  %v804_v41 = vmul.f32 0.6931472, %v511_v37  ;;  %vm807_vm11 = vcmp.lt.f32.partialorder %v218_v21, 0.0004427343  ;;  %v234_v47 = vadd.f32 1.0, %v233_v36  ;;  %v138_v40 = vmax.f32 %v787_v29, -100.0 }
  0x5d   :  { %v515_v46 = vpop.eup %514  ;;  %442 = vst.msk [vmem:[#allocation7] sm:$0xff] %vm68_vm0, %v440_v38  ;;  %v812_v45 = vmul.f32 0.6931472, %v513_v35  ;;  %v236_v48 = vand.u32 2147483647, %v773_v0  ;;  %v248_v49 = vadd.f32 1.0, %v775_v4  ;;  %v217_v54 = vmul.f32 %v216_v33, %v156_v63 }
  0x5e   :  { %v517_v53 = vpop.eup %516  ;;  %v817_v10 = vmul.f32 0.6931472, %v515_v46  ;;  %v140_v26 = vmax.f32 %v800_v34, -100.0  ;;  %v251_v55 = vmul.f32 -0.5, %v775_v4  ;;  %v142_v58 = vmax.f32 %v804_v41, -100.0  ;;  %v88_v33 = vld [vmem:[#allocation5 + $0x8] sm:$0xff] }
  0x5f   :  { %v519_v52 = vpop.eup %518  ;;  %v821_v51 = vmul.f32 0.6931472, %v517_v53  ;;  %v235_v30 = vmul.f32 %v234_v47, %v773_v0  ;;  %528 = vlog2.f32 %v248_v49  ;;  %v144_v57 = vmax.f32 %v812_v45, -100.0  ;;  %v92_v46 = vld [vmem:[#allocation5 + $0x28] sm:$0xff]  ;;  %v94_v45 = vld [vmem:[#allocation5 + $0x38] sm:$0xff] }
  0x60   :  { %v521_v59 = vpop.eup %520  ;;  %v825_v60 = vmul.f32 0.6931472, %v519_v52  ;;  %v252_v61 = vadd.f32 1.0, %v251_v55  ;;  %v254_v62 = vand.u32 2147483647, %v775_v4  ;;  %v266_v5 = vadd.f32 1.0, %v778_v7 }
  0x61   :  { %v523_v2 = vpop.eup %522  ;;  %v178_v63 = vmul.f32 0.6931472, %v521_v59  ;;  %vm829_vm12 = vcmp.lt.f32.partialorder %v236_v48, 0.0004427343  ;;  %v269_v8 = vmul.f32 -0.5, %v778_v7  ;;  %v146_v9 = vmax.f32 %v817_v10, -100.0 }
  0x62   :  { %v525_v0 = vpop.eup %524  ;;  %v148_v13 = vmax.f32 %v821_v51, -100.0  ;;  %v150_v39 = vmax.f32 %v825_v60, -100.0  ;;  %v196_v50 = vmul.f32 0.6931472, %v523_v2  ;;  %v253_v44 = vmul.f32 %v252_v61, %v775_v4  ;;  %v96_v10 = vld [vmem:[#allocation5 + $0x48] sm:$0xff] }
  0x63   :  { %v214_v15 = vmul.f32 0.6931472, %v525_v0  ;;  %530 = vlog2.f32 %v266_v5  ;;  %v270_v56 = vadd.f32 1.0, %v269_v8  ;;  %vm839_vm13 = vcmp.lt.f32.partialorder %v254_v62, 0.0004427343  ;;  %v100_v59 = vld [vmem:[#allocation5 + $0x68] sm:$0xff] }
  0x64   :  { %v272_v1 = vand.u32 2147483647, %v778_v7  ;;  %v284_v6 = vadd.f32 1.0, %v780_v16  ;;  %v287_v11 = vmul.f32 -0.5, %v780_v16  ;;  %v184_v12 = vsel %vm791_vm9, %v789_v31, %v178_v63 }
  0x65   :  { %v527_v19 = vpop.eup %526  ;;  %v202_v4 = vsel %vm795_vm10, %v802_v17, %v196_v50  ;;  %v290_v20 = vand.u32 2147483647, %v780_v16  ;;  %v302_v21 = vadd.f32 1.0, %v784_v25  ;;  %v220_v22 = vsel %vm807_vm11, %v217_v54, %v214_v15  ;;  %v90_v17 = vld [vmem:[#allocation5 + $0x18] sm:$0xff] }
  0x66   :  { %v232_v23 = vmul.f32 0.6931472, %v527_v19  ;;  %532 = vlog2.f32 %v284_v6  ;;  %v288_v27 = vadd.f32 1.0, %v287_v11  ;;  %v271_v28 = vmul.f32 %v270_v56, %v778_v7  ;;  %v98_v54 = vld [vmem:[#allocation5 + $0x58] sm:$0xff] }
  0x67   :  { %534 = vlog2.f32 %v302_v21  ;;  %v305_v32 = vmul.f32 -0.5, %v784_v25  ;;  %v308_v31 = vand.u32 2147483647, %v784_v25  ;;  %vm861_vm14 = vcmp.lt.f32.partialorder %v272_v1, 0.0004427343 }
  0x68   :  { %v238_v14 = vsel %vm829_vm12, %v235_v30, %v232_v23  ;;  %v289_v37 = vmul.f32 %v288_v27, %v780_v16  ;;  %vm866_vm15 = vcmp.lt.f32.partialorder %v290_v20, 0.0004427343  ;;  %v312_v43 = vmax.f32 %v184_v12, -100.0 }
  0x69   :  { %v529_v7 = vpop.eup %528  ;;  %v306_v35 = vadd.f32 1.0, %v305_v32  ;;  %vm870_vm1 = vcmp.lt.f32.partialorder %v308_v31, 0.0004427343  ;;  %v314_v47 = vmax.f32 %v202_v4, -100.0  ;;  %v316_v49 = vmax.f32 %v220_v22, -100.0 }
  0x6a   :  { %v250_v48 = vmul.f32 0.6931472, %v529_v7  ;;  %v318_v53 = vmax.f32 %v238_v14, -100.0  ;;  %v328_v16 = vmul.f32 %v136_v42, %v88_v33  ;;  %v330_v52 = vmul.f32 %v138_v40, %v90_v17  ;;  %v102_v42 = vld [vmem:[#allocation5 + $0x78] sm:$0xff] }
  0x6b   :  { %v307_v55 = vmul.f32 %v306_v35, %v784_v25  ;;  %v332_v51 = vmul.f32 %v140_v26, %v92_v46  ;;  %v334_v30 = vmul.f32 %v142_v58, %v94_v45  ;;  %v336_v62 = vmul.f32 %v144_v57, %v96_v10 }
  0x6c   :  { %v256_v61 = vsel %vm839_vm13, %v253_v44, %v250_v48  ;;  %v338_v2 = vmul.f32 %v146_v9, %v98_v54  ;;  %v344_v63 = vsub.f32 1.0, %v88_v33  ;;  %v346_v5 = vsub.f32 1.0, %v90_v17 }
  0x6d   :  { %v531_v24 = vpop.eup %530  ;;  %v320_v3 = vmax.f32 %v256_v61, -100.0  ;;  %v348_v8 = vsub.f32 1.0, %v92_v46  ;;  %v350_v25 = vsub.f32 1.0, %v94_v45  ;;  %v340_v29 = vmul.f32 %v148_v13, %v100_v59 }
  0x6e   :  { %v268_v0 = vmul.f32 0.6931472, %v531_v24  ;;  %v352_v40 = vsub.f32 1.0, %v96_v10  ;;  %v354_v50 = vsub.f32 1.0, %v98_v54  ;;  %v356_v34 = vsub.f32 1.0, %v100_v59 }
  0x6f   :  { %v360_v26 = vmul.f32 %v344_v63, %v312_v43  ;;  %v362_v58 = vmul.f32 %v346_v5, %v314_v47  ;;  %v364_v15 = vmul.f32 %v348_v8, %v316_v49  ;;  %v358_v9 = vsub.f32 1.0, %v102_v42 }
  0x70   :  { %v533_v56 = vpop.eup %532  ;;  %v274_v57 = vsel %vm861_vm14, %v271_v28, %v268_v0  ;;  %v366_v44 = vmul.f32 %v350_v25, %v318_v53  ;;  %v368_v18 = vmul.f32 %v352_v40, %v320_v3  ;;  %v342_v7 = vmul.f32 %v150_v39, %v102_v42 }
  0x71   :  { %v535_v1 = vpop.eup %534  ;;  %v286_v6 = vmul.f32 0.6931472, %v533_v56  ;;  %v322_v11 = vmax.f32 %v274_v57, -100.0  ;;  %v376_v19 = vadd.f32 %v360_v26, %v328_v16  ;;  %v378_v12 = vadd.f32 %v362_v58, %v330_v52 }
  0x72   :  { %v304_v4 = vmul.f32 0.6931472, %v535_v1  ;;  %v380_v13 = vadd.f32 %v364_v15, %v332_v51  ;;  %v382_v20 = vadd.f32 %v366_v44, %v334_v30  ;;  %v384_v21 = vadd.f32 %v368_v18, %v336_v62  ;;  %v408_v62 = vld [vmem:[#allocation7 + $0x8] sm:$0xff] }
  0x73   :  { %v292_v22 = vsel %vm866_vm15, %v289_v37, %v286_v6  ;;  %v370_v23 = vmul.f32 %v354_v50, %v322_v11  ;;  %v392_v27 = vsub.f32 0.0, %v376_v19  ;;  %v394_v32 = vsub.f32 0.0, %v378_v12 }
  0x74   :  { %v310_v28 = vsel %vm870_vm1, %v307_v55, %v304_v4  ;;  %v324_v31 = vmax.f32 %v292_v22, -100.0  ;;  %v396_v33 = vsub.f32 0.0, %v380_v13  ;;  %v398_v14 = vsub.f32 0.0, %v382_v20 }
  0x75   :  { %v326_v36 = vmax.f32 %v310_v28, -100.0  ;;  %v386_v17 = vadd.f32 %v370_v23, %v338_v2  ;;  %v425_v35 = vsel %vm68_vm0, %v392_v27, 0.0  ;;  %v400_v47 = vsub.f32 0.0, %v384_v21 }
  0x76   :  { %v372_v43 = vmul.f32 %v356_v34, %v324_v31  ;;  %v426_v37 = vsel %vm68_vm0, %v394_v32, 0.0  ;;  %v428_v38 = vsel %vm68_vm0, %v396_v33, 0.0  ;;  %v430_v49 = vsel %vm68_vm0, %v398_v14, 0.0 }
  0x77   :  { %v374_v46 = vmul.f32 %v358_v9, %v326_v36  ;;  %v427_v45 = vadd.f32 %v426_v37, %v425_v35  ;;  %v402_v48 = vsub.f32 0.0, %v386_v17  ;;  %v432_v60 = vsel %vm68_vm0, %v400_v47, 0.0 }
  0x78   :  { %v388_v41 = vadd.f32 %v372_v43, %v340_v29 }
  0x79   :  { %v390_v53 = vadd.f32 %v374_v46, %v342_v7  ;;  %v429_v16 = vadd.f32 %v428_v38, %v427_v45  ;;  %v434_v55 = vsel %vm68_vm0, %v402_v48, 0.0 }
  0x7a   :  { %v404_v10 = vsub.f32 0.0, %v388_v41 }
  0x7b   :  { %v431_v39 = vadd.f32 %v430_v49, %v429_v16  ;;  %v406_v54 = vsub.f32 0.0, %v390_v53 }
  0x7c   :  { %v436_v51 = vsel %vm68_vm0, %v404_v10, 0.0 }
  0x7d   :  { %v433_v52 = vadd.f32 %v432_v60, %v431_v39  ;;  %v438_v59 = vsel %vm68_vm0, %v406_v54, 0.0 }
  0x7f   :  { %v435_v30 = vadd.f32 %v434_v55, %v433_v52 }
  0x81   :  { %v437_v61 = vadd.f32 %v436_v51, %v435_v30 }
  0x83   :  { %v439_v2 = vadd.f32 %v438_v59, %v437_v61 }
  0x85   :  { %v441_v63 = vadd.f32 %v439_v2, %v408_v62 }
  0x87   :  { %443 = vst.msk [vmem:[#allocation7 + $0x8] sm:$0xff] %vm68_vm0, %v441_v63 }
  0x88   :  { %591 = shalt.err (!%p588_p6)
}
  0x89   :  { %s592_s10 = scalar_lea.hbm %s917_s2, 256 }
  0x8a   :  { %p593_p7 = scmp.ne.s32.totalorder %s917_s2, %s592_s10  ;;  %p596_p8 = scmp.lt.u32.totalorder %s592_s10, %s917_s2 }
  0x8c   :  { %p598_p9 = pnand %p596_p8, %p593_p7 }
  0x8e   :  { %601 = shalt.err (!%p598_p9)
}
  0x8f   :  { %455 = dma.vmem_to_hbm [thread:$0]  %s450_s6, 256, %s917_s2, [#allocation4], %s609_s19, %s609_s19, %s610_s20  }
  0x90   :  { %606 = dma.done.wait [#allocation4], 256  }
  0x91   :  { %607 = vsyncadd [#allocation4], 4294967040 }
  0x92   :  { %459 = vsyncpa [#allocation3], 1 }
  0x93   :  { %460 = vsyncpa [#allocation6], 1 }
  0x94   :  { %461 = vsyncpa [#allocation4], 1 }

</bundles_post_ra>
